<compile_context>
chip_gen: v5e
topology: v5e:2x2
jax: 0.10.0
libtpu: 0.0.40
codegen_flags: <defaults>
</compile_context>

<pallas_src>
import functools

import jax
import jax.numpy as jnp
from jax.experimental import pallas as pl
from jax.experimental.pallas import tpu as pltpu


def _softmax_col_sums(x, row_offset, n_total):
    """Column sums of the row-wise softmax of x; tile-padding rows contribute 0."""
    t, _ = x.shape
    needs_mask = (n_total % t) != 0  # static Python bool: padded last tile exists
    if needs_mask:
        row_idx = row_offset + jax.lax.broadcasted_iota(jnp.int32, (t, 1), 0)
        valid = row_idx < n_total  # (t, 1)
        x = jnp.where(valid, x, 0.0)  # padded block rows are undefined -> neutralize
    x_max = jnp.max(x, axis=-1, keepdims=True)
    e = jnp.exp(x - x_max)
    p = e * pl.reciprocal(jnp.sum(e, axis=-1, keepdims=True), approx=True)
    if needs_mask:
        p = jnp.where(valid, p, 0.0)  # padded rows contribute nothing
    return jnp.sum(p, axis=0, keepdims=True)  # (1, M)


def _reduce_to_loss(col_sums, lambda_A):
    """Fold (1, M) softmax column sums into the scalar assignment-constraint loss."""
    _, m = col_sums.shape
    col_idx = jax.lax.broadcasted_iota(jnp.int32, (1, m), 1)
    # col 0   : sum_n p[n, 0] == sum_n |sum_{j>=1} p[n, j] - 1|  (row-constraint loss)
    # col j>=1: |col_sum_j - 1|                                   (col-constraint terms)
    per_col = jnp.where(col_idx == 0, col_sums, jnp.abs(col_sums - 1.0))
    return lambda_A * jnp.sum(per_col, keepdims=True)  # (1, 1)


def _matching_loss_single_tile_kernel(pred_ref, out_ref, *, lambda_A, n_total):
    x = pred_ref[...].astype(jnp.float32)  # (tn, M)
    out_ref[...] = _reduce_to_loss(_softmax_col_sums(x, 0, n_total), lambda_A)


def _matching_loss_kernel(pred_ref, out_ref, col_acc, *, lambda_A, n_total):
    i = pl.program_id(0)
    t = pred_ref.shape[0]

    @pl.when(i == 0)
    def _init():
        col_acc[...] = jnp.zeros_like(col_acc)

    x = pred_ref[...].astype(jnp.float32)  # (tn, M)
    col_acc[...] += _softmax_col_sums(x, i * t, n_total)

    @pl.when(i == pl.num_programs(0) - 1)
    def _finalize():
        out_ref[...] = _reduce_to_loss(col_acc[...], lambda_A)


def matching_loss(predictions, lambda_A=0.08, tile_n=None):
    n, m = predictions.shape
    itemsize = jnp.dtype(predictions.dtype).itemsize
    sub = max(8, 32 // itemsize)  # sublane granularity: 8 (f32), 16 (bf16), 32 (int8)

    def round_up(v, k):
        return ((v + k - 1) // k) * k

    if tile_n is None:
        # Largest row tile keeping 2 (double-buffer) x TN x M x itemsize <= ~8 MiB,
        # comfortably inside default scoped VMEM on v5e / v6e / v7x.
        per_row = max(1, m * itemsize)
        tn_cap = max(sub, min(4096, (4 * 1024 * 1024 // per_row) // sub * sub))
        tn = min(tn_cap, round_up(n, sub))
    else:
        tn = round_up(max(int(tile_n), sub), sub)

    grid_n = pl.cdiv(n, tn)
    common = dict(lambda_A=float(lambda_A), n_total=n)
    cparams = pltpu.CompilerParams(
        dimension_semantics=("arbitrary",),
        vmem_limit_bytes=32 * 1024 * 1024,
    )

    if grid_n == 1:
        # Common small-N case: single tile, no cross-step accumulator / pl.when phases.
        out = pl.pallas_call(
            functools.partial(_matching_loss_single_tile_kernel, **common),
            out_shape=jax.ShapeDtypeStruct((1, 1), jnp.float32),
            grid_spec=pltpu.PrefetchScalarGridSpec(
                num_scalar_prefetch=0,
                grid=(1,),
                in_specs=[pl.BlockSpec((tn, m), lambda i: (0, 0))],
                out_specs=pl.BlockSpec((1, 1), lambda i: (0, 0)),
            ),
            compiler_params=cparams,
        )(predictions)
    else:
        out = pl.pallas_call(
            functools.partial(_matching_loss_kernel, **common),
            out_shape=jax.ShapeDtypeStruct((1, 1), jnp.float32),
            grid_spec=pltpu.PrefetchScalarGridSpec(
                num_scalar_prefetch=0,
                grid=(grid_n,),
                in_specs=[pl.BlockSpec((tn, m), lambda i: (i, 0))],
                out_specs=pl.BlockSpec((1, 1), lambda i: (0, 0)),
                scratch_shapes=[pltpu.VMEM((1, m), jnp.float32)],
            ),
            compiler_params=cparams,
        )(predictions)
    return out[0, 0]


def _reference(predictions, lambda_A=0.08):
    p = jax.nn.softmax(predictions.astype(jnp.float32), axis=-1)
    ps = p[:, 1:]
    row = jnp.sum(jnp.abs(jnp.sum(ps, axis=1) - 1.0))
    col = jnp.sum(jnp.abs(jnp.sum(ps, axis=0) - 1.0))
    return lambda_A * (row + col)


if __name__ == "__main__":
    key = jax.random.PRNGKey(0)

    # Small shape consistent with the module: [N, M] prediction matrix (single-tile path).
    predictions = jax.random.normal(key, (8, 16), dtype=jnp.float32)
    loss = matching_loss(predictions, lambda_A=0.08)
    jax.block_until_ready(loss)
    ref = _reference(predictions, lambda_A=0.08)
    assert jnp.allclose(loss, ref, rtol=5e-3, atol=5e-3), (loss, ref)

    # Multi-tile accumulation path + partial last tile (44 rows, tile of 8).
    key2 = jax.random.PRNGKey(1)
    predictions2 = jax.random.normal(key2, (44, 16), dtype=jnp.float32)
    loss2 = matching_loss(predictions2, lambda_A=0.08, tile_n=8)
    jax.block_until_ready(loss2)
    ref2 = _reference(predictions2, lambda_A=0.08)
    assert jnp.allclose(loss2, ref2, rtol=5e-3, atol=5e-3), (loss2, ref2)

    # Default tiling with N not a multiple of the sublane granularity.
    key3 = jax.random.PRNGKey(2)
    predictions3 = jax.random.normal(key3, (93, 48), dtype=jnp.float32)
    loss3 = matching_loss(predictions3, lambda_A=0.08)
    jax.block_until_ready(loss3)
    ref3 = _reference(predictions3, lambda_A=0.08)
    assert jnp.allclose(loss3, ref3, rtol=5e-3, atol=5e-3), (loss3, ref3)

    print("KERNEL_OK")
</pallas_src>

<mosaic_0001>
module attributes {stable_mosaic.version = 11 : i64} {
  func.func @_matching_loss_single_tile_kernel(%arg0: i32, %arg1: memref<8x16xf32, #tpu.memory_space<vmem>>, %arg2: memref<1x1xf32, #tpu.memory_space<vmem>>) attributes {dimension_semantics = [#tpu.dimension_semantics<arbitrary>], iteration_bounds = array<i64: 1>, scalar_prefetch = 0 : i64, scratch_operands = 0 : i64, tpu.core_type = #tpu.core_type<tc>, window_params = [{pipeline_mode = #tpu.pipeline_mode<synchronous>, transform_indices = @transform_0, window_bounds = array<i64: 8, 16>}, {pipeline_mode = #tpu.pipeline_mode<synchronous>, transform_indices = @transform_1, window_bounds = array<i64: 1, 1>}]} {
    %c0 = arith.constant 0 : index
    %c0_0 = arith.constant 0 : index
    %0 = vector.load %arg1[%c0, %c0_0] : memref<8x16xf32, #tpu.memory_space<vmem>>, vector<8x16xf32>
    %cst = arith.constant dense<0xFF800000> : vector<8xf32>
    %1 = vector.multi_reduction <maximumf>, %0, %cst [1] : vector<8x16xf32> to vector<8xf32>
    %2 = vector.shape_cast %1 : vector<8xf32> to vector<8x1xf32>
    %3 = vector.broadcast %2 : vector<8x1xf32> to vector<8x16xf32>
    %4 = arith.subf %0, %3 : vector<8x16xf32>
    %5 = math.exp %4 : vector<8x16xf32>
    %cst_1 = arith.constant dense<0.000000e+00> : vector<8xf32>
    %6 = vector.multi_reduction <add>, %5, %cst_1 [1] : vector<8x16xf32> to vector<8xf32>
    %7 = vector.shape_cast %6 : vector<8xf32> to vector<8x1xf32>
    %8 = tpu.reciprocal %7 {approx = true} : vector<8x1xf32> -> vector<8x1xf32>
    %9 = vector.broadcast %8 : vector<8x1xf32> to vector<8x16xf32>
    %10 = arith.mulf %5, %9 : vector<8x16xf32>
    %cst_2 = arith.constant dense<0.000000e+00> : vector<16xf32>
    %11 = vector.multi_reduction <add>, %10, %cst_2 [0] : vector<8x16xf32> to vector<16xf32>
    %12 = vector.shape_cast %11 : vector<16xf32> to vector<1x16xf32>
    %13 = tpu.iota {dimensions = array<i32: 1>} : vector<1x16xi32>
    %c0_i32 = arith.constant 0 : i32
    %14 = vector.broadcast %c0_i32 : i32 to vector<1x16xi32>
    %15 = arith.cmpi eq, %13, %14 : vector<1x16xi32>
    %cst_3 = arith.constant 1.000000e+00 : f32
    %16 = vector.broadcast %cst_3 : f32 to vector<1x16xf32>
    %17 = arith.subf %12, %16 : vector<1x16xf32>
    %18 = math.absf %17 : vector<1x16xf32>
    %19 = arith.select %15, %12, %18 : vector<1x16xi1>, vector<1x16xf32>
    %20 = vector.shape_cast %19 : vector<1x16xf32> to vector<1x1x16xf32>
    %cst_4 = arith.constant dense<0.000000e+00> : vector<1xf32>
    %21 = vector.multi_reduction <add>, %20, %cst_4 [1, 2] : vector<1x1x16xf32> to vector<1xf32>
    %22 = vector.shape_cast %21 : vector<1xf32> to vector<1x1x1xf32>
    %23 = vector.extract %22[0, 0, 0] : f32 from vector<1x1x1xf32>
    %24 = vector.broadcast %23 : f32 to vector<1x1xf32>
    %cst_5 = arith.constant 8.000000e-02 : f32
    %25 = vector.broadcast %cst_5 : f32 to vector<1x1xf32>
    %26 = arith.mulf %25, %24 : vector<1x1xf32>
    %c0_6 = arith.constant 0 : index
    %c0_7 = arith.constant 0 : index
    %27 = vector.load %arg2[%c0_6, %c0_7] : memref<1x1xf32, #tpu.memory_space<vmem>>, vector<1x1xf32>
    tpu.vector_store %arg2[%c0_6, %c0_7], %26 {strides = array<i32>} : memref<1x1xf32, #tpu.memory_space<vmem>>, vector<1x1xf32>,
    return
  }
  func.func @transform_0(%arg0: i32) -> (i32, i32) {
    %c0_i32 = arith.constant 0 : i32
    %c0_i32_0 = arith.constant 0 : i32
    %c0_i32_1 = arith.constant 0 : i32
    return %c0_i32, %c0_i32_0 : i32, i32
  }
  func.func @transform_1(%arg0: i32) -> (i32, i32) {
    %c0_i32 = arith.constant 0 : i32
    %c0_i32_0 = arith.constant 0 : i32
    %c0_i32_1 = arith.constant 0 : i32
    return %c0_i32, %c0_i32_0 : i32, i32
  }
}

</mosaic_0001>

<bundles_post_ra>
// kernel: tpu_custom_call.1
= control target key start
LH: loop header
LB: loop body
LE: loop exit
PB: predicated region body
PF: predicated region fallthrough
CT: control target
= control target key end

     0   :  { %6 = vsyncpa [#allocation3], 0  ;;  %s160_s0 = inlined_call_operand.hbm [shape: f32[8,16], index: 0, kind: input, shape index: {}]   ;;  %s161_s1 = inlined_call_operand.hbm [shape: f32[1,1], index: 1, kind: output, shape index: {}]  }
   0x1   :  { %7 = vsyncpa [#allocation4], 0  ;;  %s13_s8 = sshll.u32 %s160_s0, 4  ;;  %s142_s9 = smov [#allocation2]   ;;  %s14_s8 = int_to_ptr.hbm [resolvable:$true] %s13_s8 }
   0x2   :  { %s15_s10 = sshll.u32 %s142_s9, 4  ;;  %s16_s10 = int_to_ptr.vmem [resolvable:$true] %s15_s10 }
   0x3   :  { %18 = dma.hbm_to_vmem [thread:$0]  %s14_s8, 128, %s16_s10, [#allocation3]  }
   0x4   :  { %138 = dma.done.wait [#allocation3], 128  }
   0x5   :  { %139 = vsyncadd [#allocation3], 4294967168  ;;  %vm24_vm0 = vcmask 130048   ;;  %v23_v0 = vld [vmem:[#allocation2] sm:$0xff]  ;;  %v43_v14 = vlaneseq  ;;  %vm49_vm2 = vcmask 122880   ;;  %s143_s0 = smov [#allocation5]  }
   0x6   :  { %v25_v1 = vsel %vm24_vm0, %v23_v0, -inf  ;;  %s69_s11 = sshll.u32 %s143_s0, 4  ;;  %s71_s14 = sshll.u32 %s161_s1, 4  ;;  %vm62_vm3 = vcmask 0   ;;  %s70_s11 = int_to_ptr.vmem [resolvable:$true] %s69_s11  ;;  %s72_s14 = int_to_ptr.hbm [resolvable:$true] %s71_s14 }
   0x7   :  { %26 = vmax.xlane.f32.xlu0 %v25_v1  ;;  %v44_v17 = vand.u32 127, %v43_v14 }
   0x9   :  { %vm45_vm1 = vcmp.eq.s32.totalorder %v44_v17, 0 }
  0x7a   :  { %v27_v2 = vpop.xlane.xlu0 %26 }
  0x7b   :  { %v28_v3 = vsub.f32 %v23_v0, %v27_v2 }
  0x7d   :  { %v29_v4 = vmul.f32 1.442695, %v28_v3 }
  0x7f   :  { %86 = vpow2.f32 %v29_v4 }
  0x85   :  { %v87_v5 = vpop.eup %86 }
  0x86   :  { %v31_v6 = vsel %vm24_vm0, %v87_v5, 0.0 }
  0x87   :  { %32 = vadd.xlane.f32.xlu0 %v31_v6 }
  0xfa   :  { %v33_v7 = vpop.xlane.xlu0 %32 }
  0xfb   :  { %88 = vrcp.f32 %v33_v7 }
 0x101   :  { %v89_v8 = vpop.eup %88 }
 0x102   :  { %v35_v9 = vmul.f32 %v89_v8, %v87_v5 }
 0x104   :  { %v36_v10 = vsel %vm24_vm0, %v35_v9, 0.0 }
 0x105   :  { %v37_v11 = vrot.slane %v36_v10, 4 }
 0x107   :  { %v38_v12 = vadd.f32 %v37_v11, %v36_v10 }
 0x109   :  { %v39_v13 = vrot.slane %v38_v12, 2 }
 0x10b   :  { %v40_v15 = vadd.f32 %v39_v13, %v38_v12 }
 0x10d   :  { %v41_v16 = vrot.slane %v40_v15, 1 }
 0x10f   :  { %v42_v18 = vadd.f32 %v41_v16, %v40_v15 }
 0x111   :  { %v81_v19 = vadd.f32 -1.0, %v42_v18 }
 0x113   :  { %v47_v20 = vand.u32 2147483647, %v81_v19 }
 0x115   :  { %v48_v21 = vsel %vm45_vm1, %v42_v18, %v47_v20 }
 0x116   :  { %v50_v22 = vsel %vm49_vm2, %v48_v21, 0.0 }
 0x117   :  { %51 = vadd.xlane.f32.xlu1 %v50_v22 }
 0x18a   :  { %v52_v23 = vpop.xlane.xlu1 %51 }
 0x18b   :  { %v53_v24 = vrot.slane %v52_v23, 4 }
 0x18d   :  { %v54_v25 = vadd.f32 %v53_v24, %v52_v23 }
 0x18f   :  { %v55_v26 = vrot.slane %v54_v25, 2 }
 0x191   :  { %v56_v27 = vadd.f32 %v55_v26, %v54_v25 }
 0x193   :  { %v57_v28 = vrot.slane %v56_v27, 1 }
 0x195   :  { %v58_v29 = vadd.f32 %v57_v28, %v56_v27 }
 0x197   :  { %82 = vpush %v58_v29 }
 0x1c8   :  { %s83_s15 = spop %82 }
 0x1c9   :  { %v60_v30 = vstv %s83_s15 }
 0x1ca   :  { %v61_v31 = vmul.f32 0.08, %v60_v30 }
 0x1cc   :  { %63 = vst.msk [vmem:[#allocation5] sm:$0x1] %vm62_vm3, %v61_v31 }
 0x1cd   :  { %74 = dma.vmem_to_hbm [thread:$0]  %s70_s11, 16, %s72_s14, [#allocation4]  }
 0x1ce   :  { %140 = dma.done.wait [#allocation4], 16  }
 0x1cf   :  { %141 = vsyncadd [#allocation4], 4294967280 }
 0x1d0   :  { %79 = vsyncpa [#allocation3], 1 }
 0x1d1   :  { %80 = vsyncpa [#allocation4], 1 }

</bundles_post_ra>
